<compile_context>
chip_gen: v6e
topology: v6e:2x2x1
jax: 0.10.0
libtpu: 0.0.40
codegen_flags: <defaults>
</compile_context>

<pallas_src>
import math

import jax
import jax.numpy as jnp
from jax.experimental import pallas as pl
from jax.experimental.pallas import tpu as pltpu

DROPOUT_P = 0.1
# Signed int32 threshold: P(uniform_int32 >= threshold) == 1 - DROPOUT_P.
_KEEP_THRESHOLD_I32 = int(round(DROPOUT_P * (1 << 32))) - (1 << 31)


def _pe_dropout_kernel(seed_ref, x_ref, pe_ref, o_ref):
    # seed_ref : SMEM (1,) int32    - dropout PRNG seed (scalar-prefetch)
    # x_ref    : VMEM (TS, B, D)    - input activations tile
    # pe_ref   : VMEM (TS, 1, D)    - positional embeddings tile
    # o_ref    : VMEM (TS, B, D)    - output tile
    ts, b, d = x_ref.shape

    y = x_ref[...] + pe_ref[...]                       # broadcast pe over the batch axis

    # ---- dropout mask: stateless hash of (seed, global element index) ---------------
    # Unique index per element of the full (S, B, D) array -> mask is uncorrelated
    # across grid tiles (and across megacore shards).
    seq0 = pl.program_id(0) * ts
    s_idx = jax.lax.broadcasted_iota(jnp.int32, (ts, b, d), 0) + seq0
    b_idx = jax.lax.broadcasted_iota(jnp.int32, (ts, b, d), 1)
    d_idx = jax.lax.broadcasted_iota(jnp.int32, (ts, b, d), 2)
    flat = ((s_idx * b + b_idx) * d + d_idx).astype(jnp.uint32)

    # Mix the user seed in as a scalar (no per-element VALU cost).
    seed_mix = (seed_ref[0].astype(jnp.uint32) + jnp.uint32(1)) * jnp.uint32(0x9E3779B9)

    # lowbias32 finalizer: 2 int muls + 3 xors + 3 logical shifts per element.
    h = flat ^ seed_mix
    h = h ^ (h >> jnp.uint32(16))
    h = h * jnp.uint32(0x7FEB352D)
    h = h ^ (h >> jnp.uint32(15))
    h = h * jnp.uint32(0x846CA68B)
    h = h ^ (h >> jnp.uint32(16))

    # Single signed compare (bit-reinterpret of the uniform hash) -> keep prob = 1 - p.
    keep = h.astype(jnp.int32) >= jnp.int32(_KEEP_THRESHOLD_I32)

    scale = 1.0 / (1.0 - DROPOUT_P)                    # weak-typed: stays in y's dtype
    o_ref[...] = jnp.where(keep, y * scale, 0.0).astype(o_ref.dtype)


def make_position_embeds(d_model: int, max_len: int = 5000) -> jnp.ndarray:
    """Deterministic parameter setup, mirrors the PyTorch __init__ buffer."""
    position = jnp.arange(max_len, dtype=jnp.float32)[:, None]                   # (max_len, 1)
    div_term = jnp.exp(jnp.arange(0, d_model, 2, dtype=jnp.float32)
                       * (-math.log(10000.0) / d_model))                         # (d_model//2,)
    pe = jnp.zeros((max_len, 1, d_model), dtype=jnp.float32)
    pe = pe.at[:, 0, 0::2].set(jnp.sin(position * div_term))
    pe = pe.at[:, 0, 1::2].set(jnp.cos(position * div_term))
    return pe


def _choose_seq_tile(seq_len: int, batch: int, d_model: int, itemsize: int,
                     target_bytes: int = 4 * 1024 * 1024) -> int:
    # ~4 MiB per buffer: double-buffered x + out + tiny pe stays well under the
    # 32 MiB scoped VMEM default (and the 64 MiB physical cap on v7x).
    row_bytes = max(1, batch * d_model * itemsize)
    return int(max(1, min(seq_len, target_bytes // row_bytes)))


def positional_encoding_forward(x: jnp.ndarray,
                                position_embeds: jnp.ndarray,
                                seed: int = 0) -> jnp.ndarray:
    """x: [seq_len, batch, d_model]  ->  [seq_len, batch, d_model]"""
    S, B, D = x.shape
    assert position_embeds.ndim == 3 and position_embeds.shape[1] == 1
    assert position_embeds.shape[0] >= S and position_embeds.shape[2] == D

    pe = position_embeds.astype(x.dtype)       # keep the add in x's dtype (bf16-friendly)
    itemsize = jnp.dtype(x.dtype).itemsize
    ts = _choose_seq_tile(S, B, D, itemsize)
    grid = (pl.cdiv(S, ts),)

    seed_arr = jnp.asarray([seed], dtype=jnp.int32)

    cost = pl.CostEstimate(
        flops=3 * S * B * D,
        transcendentals=0,
        bytes_accessed=2 * S * B * D * itemsize + S * D * itemsize,
    )

    return pl.pallas_call(
        _pe_dropout_kernel,
        out_shape=jax.ShapeDtypeStruct((S, B, D), x.dtype),
        grid_spec=pltpu.PrefetchScalarGridSpec(
            num_scalar_prefetch=1,                                     # seed -> SMEM
            grid=grid,
            in_specs=[
                pl.BlockSpec((ts, B, D), lambda i, seed: (i, 0, 0)),   # x tile
                pl.BlockSpec((ts, 1, D), lambda i, seed: (i, 0, 0)),   # pe tile (full buffer, no wrapper slice)
            ],
            out_specs=pl.BlockSpec((ts, B, D), lambda i, seed: (i, 0, 0)),
        ),
        compiler_params=pltpu.CompilerParams(
            dimension_semantics=("parallel",),                         # megacore shard over seq tiles (v7x)
            vmem_limit_bytes=32 * 1024 * 1024,
        ),
        cost_estimate=cost,
    )(seed_arr, x, pe)


if __name__ == "__main__":
    key = jax.random.PRNGKey(0)

    seq_len, batch, d_model = 8, 2, 32
    x = jax.random.normal(key, (seq_len, batch, d_model), dtype=jnp.float32)

    pe_buffer = make_position_embeds(d_model, max_len=5000)

    out = positional_encoding_forward(x, pe_buffer, seed=0)
    out = jax.block_until_ready(out)

    assert out.shape == (seq_len, batch, d_model)
    assert out.dtype == x.dtype

    # Kept elements must equal (x + pe) / (1 - p); dropped elements are exactly 0.
    expected = (x + pe_buffer[:seq_len].astype(x.dtype)) * (1.0 / (1.0 - DROPOUT_P))
    kept = out != 0.0
    assert jnp.allclose(jnp.where(kept, out, 0.0),
                        jnp.where(kept, expected, 0.0),
                        rtol=1e-5, atol=1e-5)
    drop_frac = 1.0 - float(jnp.mean(kept.astype(jnp.float32)))
    assert 0.0 < drop_frac < 0.35, f"unexpected dropout fraction {drop_frac}"

    print("KERNEL_OK")
</pallas_src>

<mosaic_0001>
module attributes {stable_mosaic.version = 11 : i64} {
  func.func @_pe_dropout_kernel(%arg0: i32, %arg1: memref<1xi32, #tpu.memory_space<smem>>, %arg2: memref<8x2x32xf32, #tpu.memory_space<vmem>>, %arg3: memref<8x1x32xf32, #tpu.memory_space<vmem>>, %arg4: memref<8x2x32xf32, #tpu.memory_space<vmem>>) attributes {dimension_semantics = [#tpu.dimension_semantics<parallel>], iteration_bounds = array<i64: 1>, scalar_prefetch = 1 : i64, scratch_operands = 0 : i64, tpu.core_type = #tpu.core_type<tc>, window_params = [{transform_indices = @transform_0, window_bounds = array<i64: 8, 2, 32>}, {transform_indices = @transform_1, window_bounds = array<i64: 8, 1, 32>}, {transform_indices = @transform_2, window_bounds = array<i64: 8, 2, 32>}]} {
    %c0 = arith.constant 0 : index
    %c0_0 = arith.constant 0 : index
    %c0_1 = arith.constant 0 : index
    %0 = vector.load %arg2[%c0, %c0_0, %c0_1] : memref<8x2x32xf32, #tpu.memory_space<vmem>>, vector<8x2x32xf32>
    %c0_2 = arith.constant 0 : index
    %c0_3 = arith.constant 0 : index
    %c0_4 = arith.constant 0 : index
    %1 = vector.load %arg3[%c0_2, %c0_3, %c0_4] : memref<8x1x32xf32, #tpu.memory_space<vmem>>, vector<8x1x32xf32>
    %2 = vector.broadcast %1 : vector<8x1x32xf32> to vector<8x2x32xf32>
    %3 = arith.addf %0, %2 : vector<8x2x32xf32>
    %c8_i32 = arith.constant 8 : i32
    %4 = arith.muli %arg0, %c8_i32 : i32
    %5 = tpu.iota {dimensions = array<i32: 0>} : vector<8x2x32xi32>
    %6 = vector.broadcast %4 : i32 to vector<8x2x32xi32>
    %7 = arith.addi %5, %6 : vector<8x2x32xi32>
    %8 = tpu.iota {dimensions = array<i32: 1>} : vector<8x2x32xi32>
    %9 = tpu.iota {dimensions = array<i32: 2>} : vector<8x2x32xi32>
    %c2_i32 = arith.constant 2 : i32
    %10 = vector.broadcast %c2_i32 : i32 to vector<8x2x32xi32>
    %11 = arith.muli %7, %10 : vector<8x2x32xi32>
    %12 = arith.addi %11, %8 : vector<8x2x32xi32>
    %c32_i32 = arith.constant 32 : i32
    %13 = vector.broadcast %c32_i32 : i32 to vector<8x2x32xi32>
    %14 = arith.muli %12, %13 : vector<8x2x32xi32>
    %15 = arith.addi %14, %9 : vector<8x2x32xi32>
    %c0_5 = arith.constant 0 : index
    %16 = memref.load %arg1[%c0_5] : memref<1xi32, #tpu.memory_space<smem>>
    %c1_i32 = arith.constant 1 : i32
    %17 = arith.addi %16, %c1_i32 : i32
    %c-1640531527_i32 = arith.constant -1640531527 : i32
    %18 = arith.muli %17, %c-1640531527_i32 : i32
    %19 = vector.broadcast %18 : i32 to vector<8x2x32xi32>
    %20 = arith.xori %15, %19 : vector<8x2x32xi32>
    %c16_i32 = arith.constant 16 : i32
    %21 = vector.broadcast %c16_i32 : i32 to vector<8x2x32xi32>
    %22 = arith.shrui %20, %21 : vector<8x2x32xi32>
    %23 = arith.xori %20, %22 : vector<8x2x32xi32>
    %c2146121005_i32 = arith.constant 2146121005 : i32
    %24 = vector.broadcast %c2146121005_i32 : i32 to vector<8x2x32xi32>
    %25 = arith.muli %23, %24 : vector<8x2x32xi32>
    %c15_i32 = arith.constant 15 : i32
    %26 = vector.broadcast %c15_i32 : i32 to vector<8x2x32xi32>
    %27 = arith.shrui %25, %26 : vector<8x2x32xi32>
    %28 = arith.xori %25, %27 : vector<8x2x32xi32>
    %c-2073254261_i32 = arith.constant -2073254261 : i32
    %29 = vector.broadcast %c-2073254261_i32 : i32 to vector<8x2x32xi32>
    %30 = arith.muli %28, %29 : vector<8x2x32xi32>
    %c16_i32_6 = arith.constant 16 : i32
    %31 = vector.broadcast %c16_i32_6 : i32 to vector<8x2x32xi32>
    %32 = arith.shrui %30, %31 : vector<8x2x32xi32>
    %33 = arith.xori %30, %32 : vector<8x2x32xi32>
    %c-1717986918_i32 = arith.constant -1717986918 : i32
    %34 = vector.broadcast %c-1717986918_i32 : i32 to vector<8x2x32xi32>
    %35 = arith.cmpi sge, %33, %34 : vector<8x2x32xi32>
    %cst = arith.constant 1.11111116 : f32
    %36 = vector.broadcast %cst : f32 to vector<8x2x32xf32>
    %37 = arith.mulf %3, %36 : vector<8x2x32xf32>
    %cst_7 = arith.constant 0.000000e+00 : f32
    %38 = vector.broadcast %cst_7 : f32 to vector<8x2x32xf32>
    %39 = arith.select %35, %37, %38 : vector<8x2x32xi1>, vector<8x2x32xf32>
    %c0_8 = arith.constant 0 : index
    %c0_9 = arith.constant 0 : index
    %c0_10 = arith.constant 0 : index
    %40 = vector.load %arg4[%c0_8, %c0_9, %c0_10] : memref<8x2x32xf32, #tpu.memory_space<vmem>>, vector<8x2x32xf32>
    tpu.vector_store %arg4[%c0_8, %c0_9, %c0_10], %39 {strides = array<i32>} : memref<8x2x32xf32, #tpu.memory_space<vmem>>, vector<8x2x32xf32>,
    return
  }
  func.func @transform_0(%arg0: i32, %arg1: memref<1xi32, #tpu.memory_space<smem>>) -> (i32, i32, i32) {
    %c0_i32 = arith.constant 0 : i32
    %c0_i32_0 = arith.constant 0 : i32
    %c0_i32_1 = arith.constant 0 : i32
    return %arg0, %c0_i32, %c0_i32_0 : i32, i32, i32
  }
  func.func @transform_1(%arg0: i32, %arg1: memref<1xi32, #tpu.memory_space<smem>>) -> (i32, i32, i32) {
    %c0_i32 = arith.constant 0 : i32
    %c0_i32_0 = arith.constant 0 : i32
    %c0_i32_1 = arith.constant 0 : i32
    return %arg0, %c0_i32, %c0_i32_0 : i32, i32, i32
  }
  func.func @transform_2(%arg0: i32, %arg1: memref<1xi32, #tpu.memory_space<smem>>) -> (i32, i32, i32) {
    %c0_i32 = arith.constant 0 : i32
    %c0_i32_0 = arith.constant 0 : i32
    %c0_i32_1 = arith.constant 0 : i32
    return %arg0, %c0_i32, %c0_i32_0 : i32, i32, i32
  }
}

</mosaic_0001>

<bundles_post_ra>
// kernel: tpu_custom_call.1
= control target key start
LH: loop header
LB: loop body
LE: loop exit
PB: predicated region body
PF: predicated region fallthrough
CT: control target
= control target key end

     0   :  { %v95_v2 = vlaneseq  ;;  %s425_s0 = inlined_call_operand.<no memory space> [shape: s32[1], index: 0, kind: input, shape index: {}]   ;;  %s426_s1 = inlined_call_operand.vmem [shape: f32[8,2,32], index: 1, kind: input, shape index: {}]   ;;  %s427_s2 = inlined_call_operand.vmem [shape: f32[5000,1,32], index: 2, kind: input, shape index: {}]   ;;  %s428_s3 = inlined_call_operand.hbm [shape: f32[8,2,32], index: 3, kind: output, shape index: {}]  }
   0x1   :  { %v14_v0 = vld [vmem:[%s426_s1] sm:$0x3]  ;;  %s132_s18 = sadd.s32 1, %s425_s0  ;;  %v15_v3 = vld [vmem:[%s426_s1 + $0x2] sm:$0x3] }
   0x2   :  { %v256_v1 = vld [vmem:[%s427_s2] ss:$0 sm:$0xff]  ;;  %s133_s19 = smul.u32 2654435769, %s132_s18  ;;  %v257_v4 = vld [vmem:[%s427_s2 + $0x1] ss:$0 sm:$0xff] }
   0x3   :  { %v327_v5 = vshrl.u32 %v95_v2, 7  ;;  %v329_v6 = vand.u32 127, %v95_v2  ;;  %v16_v7 = vld [vmem:[%s426_s1 + $0x4] sm:$0x3]  ;;  %v258_v8 = vld [vmem:[%s427_s2 + $0x2] ss:$0 sm:$0xff]  ;;  %v78_v9 = vadd.f32 %v256_v1, %v14_v0  ;;  %v79_v10 = vadd.f32 %v257_v4, %v15_v3 }
   0x4   :  { %v17_v11 = vld [vmem:[%s426_s1 + $0x6] sm:$0x3]  ;;  %v259_v12 = vld [vmem:[%s427_s2 + $0x3] ss:$0 sm:$0xff]  ;;  %v80_v15 = vadd.f32 %v258_v8, %v16_v7  ;;  %v346_v17 = vstv %s133_s19  ;;  %v18_v24 = vld [vmem:[%s426_s1 + $0x8] sm:$0x3] }
   0x5   :  { %v115_v13 = vmul.u32 32, %v327_v5  ;;  %v108_v14 = vadd.s32 2, %v327_v5  ;;  %v109_v16 = vadd.s32 4, %v327_v5  ;;  %v110_v18 = vadd.s32 6, %v327_v5  ;;  %v260_v25 = vld [vmem:[%s427_s2 + $0x4] ss:$0 sm:$0xff] }
   0x6   :  { %v111_v19 = vadd.s32 8, %v327_v5  ;;  %v81_v23 = vadd.f32 %v259_v12, %v17_v11  ;;  %v357_v26 = vmul.f32 1.1111112, %v78_v9  ;;  %v359_v27 = vmul.f32 1.1111112, %v79_v10 }
   0x7   :  { %v123_v20 = vadd.s32 %v115_v13, %v329_v6  ;;  %v116_v21 = vmul.u32 32, %v108_v14  ;;  %v117_v22 = vmul.u32 32, %v109_v16  ;;  %v364_v33 = vmul.f32 1.1111112, %v80_v15  ;;  %v19_v34 = vld [vmem:[%s426_s1 + $0xa] sm:$0x3] }
   0x8   :  { %v118_v28 = vmul.u32 32, %v110_v18  ;;  %v119_v29 = vmul.u32 32, %v111_v19  ;;  %v261_v35 = vld [vmem:[%s427_s2 + $0x5] ss:$0 sm:$0xff]  ;;  %v82_v37 = vadd.f32 %v260_v25, %v18_v24  ;;  %v112_v39 = vadd.s32 10, %v327_v5 }
   0x9   :  { %v135_v30 = vxor.u32 %v346_v17, %v123_v20  ;;  %v124_v31 = vadd.s32 %v116_v21, %v329_v6  ;;  %v125_v32 = vadd.s32 %v117_v22, %v329_v6  ;;  %v377_v43 = vmul.f32 1.1111112, %v81_v23 }
   0xa   :  { %v126_v36 = vadd.s32 %v118_v28, %v329_v6  ;;  %v127_v38 = vadd.s32 %v119_v29, %v329_v6 }
   0xb   :  { %v143_v40 = vshrl.u32 %v135_v30, 16  ;;  %v136_v41 = vxor.u32 %v346_v17, %v124_v31  ;;  %v137_v42 = vxor.u32 %v346_v17, %v125_v32 }
   0xc   :  { %9 = vsyncpa [#allocation5], 0  ;;  %v138_v44 = vxor.u32 %v346_v17, %v126_v36  ;;  %v139_v45 = vxor.u32 %v346_v17, %v127_v38  ;;  %v381_v46 = vadd.f32 %v261_v35, %v19_v34  ;;  %v120_v47 = vmul.u32 32, %v112_v39  ;;  %v20_v48 = vld [vmem:[%s426_s1 + $0xc] sm:$0x3] }
   0xd   :  { %v151_v49 = vxor.u32 %v143_v40, %v135_v30  ;;  %v144_v50 = vshrl.u32 %v136_v41, 16  ;;  %v145_v51 = vshrl.u32 %v137_v42, 16  ;;  %v262_v52 = vld [vmem:[%s427_s2 + $0x6] ss:$0 sm:$0xff]  ;;  %v113_v53 = vadd.s32 12, %v327_v5 }
   0xe   :  { %v146_v54 = vshrl.u32 %v138_v44, 16  ;;  %v147_v55 = vshrl.u32 %v139_v45, 16  ;;  %v390_v56 = vmul.f32 1.1111112, %v82_v37  ;;  %v128_v57 = vadd.s32 %v120_v47, %v329_v6 }
   0xf   :  { %v159_v58 = vmul.u32 2146121005, %v151_v49  ;;  %v152_v59 = vxor.u32 %v144_v50, %v136_v41  ;;  %v153_v60 = vxor.u32 %v145_v51, %v137_v42  ;;  %v121_v61 = vmul.u32 32, %v113_v53 }
  0x10   :  { %v154_v62 = vxor.u32 %v146_v54, %v138_v44  ;;  %v155_v63 = vxor.u32 %v147_v55, %v139_v45  ;;  %v140_v0 = vxor.u32 %v346_v17, %v128_v57  ;;  %v394_v1 = vadd.f32 %v262_v52, %v20_v48 }
  0x11   :  { %v167_v2 = vshrl.u32 %v159_v58, 15  ;;  %v160_v3 = vmul.u32 2146121005, %v152_v59  ;;  %v161_v4 = vmul.u32 2146121005, %v153_v60  ;;  %v129_v7 = vadd.s32 %v121_v61, %v329_v6 }
  0x12   :  { %vm231_vm0 = vcmask 254976   ;;  %v162_v8 = vmul.u32 2146121005, %v154_v62  ;;  %v163_v9 = vmul.u32 2146121005, %v155_v63  ;;  %v148_v10 = vshrl.u32 %v140_v0, 16 }
  0x13   :  { %v114_v11 = vadd.s32 14, %v327_v5  ;;  %v175_v12 = vxor.u32 %v167_v2, %v159_v58  ;;  %v168_v13 = vshrl.u32 %v160_v3, 15  ;;  %v169_v14 = vshrl.u32 %v161_v4, 15 }
  0x14   :  { %v141_v15 = vxor.u32 %v346_v17, %v129_v7  ;;  %v170_v16 = vshrl.u32 %v162_v8, 15  ;;  %v171_v18 = vshrl.u32 %v163_v9, 15  ;;  %v156_v19 = vxor.u32 %v148_v10, %v140_v0  ;;  %v21_v0 = vld [vmem:[%s426_s1 + $0xe] sm:$0x3]  ;;  %s289_s1 = smov [#allocation4]  }
  0x15   :  { %v122_v20 = vmul.u32 32, %v114_v11  ;;  %v183_v21 = vmul.u32 2221713035, %v175_v12  ;;  %v176_v22 = vxor.u32 %v168_v13, %v160_v3  ;;  %v177_v23 = vxor.u32 %v169_v14, %v161_v4  ;;  %s245_s20 = sshll.u32 %s289_s1, 4  ;;  %s246_s20 = int_to_ptr.vmem [resolvable:$true] %s245_s20 }
  0x16   :  { %v149_v24 = vshrl.u32 %v141_v15, 16  ;;  %v178_v25 = vxor.u32 %v170_v16, %v162_v8  ;;  %v179_v28 = vxor.u32 %v171_v18, %v163_v9  ;;  %v164_v29 = vmul.u32 2146121005, %v156_v19  ;;  %p272_p1 = scmp.lt.s32.totalorder %s246_s20, %s246_s20 }
  0x17   :  { %v130_v30 = vadd.s32 %v122_v20, %v329_v6  ;;  %v191_v31 = vshrl.u32 %v183_v21, 16  ;;  %v184_v5 = vmul.u32 2221713035, %v176_v22  ;;  %v185_v32 = vmul.u32 2221713035, %v177_v23 }
  0x18   :  { %v157_v34 = vxor.u32 %v149_v24, %v141_v15  ;;  %v186_v35 = vmul.u32 2221713035, %v178_v25  ;;  %v187_v36 = vmul.u32 2221713035, %v179_v28  ;;  %v172_v37 = vshrl.u32 %v164_v29, 15 }
  0x19   :  { %v142_v38 = vxor.u32 %v346_v17, %v130_v30  ;;  %v199_v39 = vxor.u32 %v191_v31, %v183_v21  ;;  %v192_v40 = vshrl.u32 %v184_v5, 16  ;;  %v193_v41 = vshrl.u32 %v185_v32, 16 }
  0x1a   :  { %v165_v42 = vmul.u32 2146121005, %v157_v34  ;;  %v194_v44 = vshrl.u32 %v186_v35, 16  ;;  %v195_v45 = vshrl.u32 %v187_v36, 16  ;;  %v180_v47 = vxor.u32 %v172_v37, %v164_v29 }
  0x1b   :  { %v150_v48 = vshrl.u32 %v142_v38, 16  ;;  %vm207_vm1 = vcmp.ge.s32.totalorder %v199_v39, 2576980378  ;;  %v200_v49 = vxor.u32 %v192_v40, %v184_v5  ;;  %v201_v6 = vxor.u32 %v193_v41, %v185_v32 }
  0x1c   :  { %v173_v50 = vshrl.u32 %v165_v42, 15  ;;  %v223_v51 = vsel %vm207_vm1, %v357_v26, 0.0  ;;  %v202_v52 = vxor.u32 %v194_v44, %v186_v35  ;;  %v203_v53 = vxor.u32 %v195_v45, %v187_v36 }
  0x1d   :  { %v188_v54 = vmul.u32 2221713035, %v180_v47  ;;  %232 = vst.msk [vmem:[#allocation4] sm:$0x3] %vm231_vm0, %v223_v51  ;;  %vm208_vm2 = vcmp.ge.s32.totalorder %v200_v49, 2576980378  ;;  %v158_v55 = vxor.u32 %v150_v48, %v142_v38 }
  0x1e   :  { %vm209_vm3 = vcmp.ge.s32.totalorder %v201_v6, 2576980378  ;;  %v181_v17 = vxor.u32 %v173_v50, %v165_v42  ;;  %v224_v57 = vsel %vm208_vm2, %v359_v27, 0.0  ;;  %vm210_vm4 = vcmp.ge.s32.totalorder %v202_v52, 2576980378 }
  0x1f   :  { %v225_v58 = vsel %vm209_vm3, %v364_v33, 0.0  ;;  %vm211_vm5 = vcmp.ge.s32.totalorder %v203_v53, 2576980378  ;;  %233 = vst.msk [vmem:[#allocation4 + $0x2] sm:$0x3] %vm231_vm0, %v224_v57  ;;  %v226_v26 = vsel %vm210_vm4, %v377_v43, 0.0 }
  0x20   :  { %234 = vst.msk [vmem:[#allocation4 + $0x4] sm:$0x3] %vm231_vm0, %v225_v58  ;;  %v227_v59 = vsel %vm211_vm5, %v390_v56, 0.0  ;;  %v196_v60 = vshrl.u32 %v188_v54, 16  ;;  %v189_v61 = vmul.u32 2221713035, %v181_v17 }
  0x21   :  { %235 = vst.msk [vmem:[#allocation4 + $0x6] sm:$0x3] %vm231_vm0, %v226_v26  ;;  %236 = vst.msk [vmem:[#allocation4 + $0x8] sm:$0x3] %vm231_vm0, %v227_v59  ;;  %v220_v27 = vmul.f32 1.1111112, %v381_v46 }
  0x22   :  { %v166_v62 = vmul.u32 2146121005, %v158_v55  ;;  %v204_v33 = vxor.u32 %v196_v60, %v188_v54  ;;  %v197_v63 = vshrl.u32 %v189_v61, 16  ;;  %v221_v2 = vmul.f32 1.1111112, %v394_v1 }
  0x23   :  { %v263_v43 = vld [vmem:[%s427_s2 + $0x7] ss:$0 sm:$0xff]  ;;  %s267_s2 = scalar_lea.vmem %s246_s20, 256 }
  0x24   :  { %v174_v56 = vshrl.u32 %v166_v62, 15  ;;  %vm212_vm6 = vcmp.ge.s32.totalorder %v204_v33, 2576980378  ;;  %v205_v3 = vxor.u32 %v197_v63, %v189_v61  ;;  %v85_v46 = vadd.f32 %v263_v43, %v21_v0  ;;  %p268_p0 = scmp.ne.s32.totalorder %s246_s20, %s267_s2  ;;  %p273_p2 = scmp.lt.s32.totalorder %s267_s2, %s267_s2 }
  0x25   :  { %v228_v4 = vsel %vm212_vm6, %v220_v27, 0.0 }
  0x26   :  { %v182_v7 = vxor.u32 %v174_v56, %v166_v62  ;;  %237 = vst.msk [vmem:[#allocation4 + $0xa] sm:$0x3] %vm231_vm0, %v228_v4  ;;  %vm213_vm7 = vcmp.ge.s32.totalorder %v205_v3, 2576980378  ;;  %v222_v1 = vmul.f32 1.1111112, %v85_v46  ;;  %p274_p3 = por %p273_p2, %p272_p1 }
  0x27   :  { %v229_v8 = vsel %vm213_vm7, %v221_v2, 0.0 }
  0x28   :  { %v190_v9 = vmul.u32 2221713035, %v182_v7  ;;  %238 = vst.msk [vmem:[#allocation4 + $0xc] sm:$0x3] %vm231_vm0, %v229_v8  ;;  %p275_p4 = pnand %p274_p3, %p268_p0 }
  0x2a   :  { %v198_v10 = vshrl.u32 %v190_v9, 16 }
  0x2c   :  { %v206_v11 = vxor.u32 %v198_v10, %v190_v9 }
  0x2e   :  { %vm214_vm8 = vcmp.ge.s32.totalorder %v206_v11, 2576980378 }
  0x2f   :  { %v230_v12 = vsel %vm214_vm8, %v222_v1, 0.0 }
  0x30   :  { %239 = vst.msk [vmem:[#allocation4 + $0xe] sm:$0x3] %vm231_vm0, %v230_v12 }
  0x31   :  { %278 = shalt.err (!%p275_p4)
}
  0x32   :  { %s290_s21 = smov 32   ;;  %s291_s22 = smov 2  }
  0x33   :  { %251 = dma.vmem_to_hbm [thread:$0]  %s246_s20, 256, %s428_s3, [#allocation5], %s290_s21, %s290_s21, %s291_s22  }
  0x34   :  { %287 = dma.done.wait [#allocation5], 256  }
  0x35   :  { %288 = vsyncadd [#allocation5], 4294967040 }
  0x36   :  { %255 = vsyncpa [#allocation5], 1 }

</bundles_post_ra>
